<compile_context>
chip_gen: v5e
topology: v5e:2x2
jax: 0.10.0
libtpu: 0.0.40
codegen_flags: <defaults>
</compile_context>

<pallas_src>
from typing import NamedTuple

import jax
import jax.numpy as jnp
from jax import lax
from jax.experimental import pallas as pl
from jax.experimental.pallas import tpu as pltpu


# ----------------------------------------------------------------------------
# Pallas MoE kernel
# ----------------------------------------------------------------------------
def moe_kernel(sched_ref,     # SMEM (nt*E,) int32 : per-tile expert schedule
               nact_ref,      # SMEM (nt,)   int32 : #active experts per tile
               x_ref,         # (tT, H)    compute dtype
               w13_ref,       # (2*tI, H)  fused gate/up weights (one i-tile)
               w2t_ref,       # (tI, H)    down-proj weights (pre-transposed)
               coeff_ref,     # (tT, E)    f32 routing coefficients
               o_ref,         # (tT, H)    output, model dtype
               acc_ref,       # (tT, H)    f32 VMEM accumulator
               c_ref):        # (tT, 1)    f32 VMEM coeff column scratch
    t = pl.program_id(0)
    e = pl.program_id(1)
    i = pl.program_id(2)
    ne = pl.num_programs(1)
    ni = pl.num_programs(2)
    tI = w2t_ref.shape[0]

    @pl.when(jnp.logical_and(e == 0, i == 0))
    def _init():
        acc_ref[...] = jnp.zeros_like(acc_ref)

    is_active = e < nact_ref[t]

    # Routing coefficient for this (token tile, expert): hoisted out of the
    # i loop -- one cross-lane select/reduce per (t, e) instead of per step.
    @pl.when(jnp.logical_and(is_active, i == 0))
    def _coeff():
        eidx = sched_ref[t * ne + e]
        col = lax.broadcasted_iota(jnp.int32, coeff_ref.shape, 1)
        c_ref[...] = jnp.sum(jnp.where(col == eidx, coeff_ref[...], 0.0),
                             axis=-1, keepdims=True)

    # Skip all MXU/VPU work for expert slots with no routed tokens.
    @pl.when(is_active)
    def _compute():
        x = x_ref[...]                                             # (tT, H)
        # gate / up projections share one fused VMEM block (single DMA);
        # contract on H, accumulate in f32 on the MXU.
        g = lax.dot_general(x, w13_ref[pl.ds(0, tI), :],
                            (((1,), (1,)), ((), ())),
                            preferred_element_type=jnp.float32)    # (tT, tI)
        u = lax.dot_general(x, w13_ref[pl.ds(tI, tI), :],
                            (((1,), (1,)), ((), ())),
                            preferred_element_type=jnp.float32)    # (tT, tI)
        act = g * jax.nn.sigmoid(g) * u                            # SiLU(g)*u
        act = (act * c_ref[...]).astype(x.dtype)                   # bf16 for MXU
        acc_ref[...] += jnp.dot(act, w2t_ref[...],
                                preferred_element_type=jnp.float32)

    @pl.when(jnp.logical_and(e == ne - 1, i == ni - 1))
    def _finalize():
        o_ref[...] = acc_ref[...].astype(o_ref.dtype)


# ----------------------------------------------------------------------------
# sparsemixer routing (top-2, no renormalization) -- plain JAX
# ----------------------------------------------------------------------------
def sparsemixer_jax(scores, jitter_eps=0.01):
    scores = scores.astype(jnp.float32)
    E = scores.shape[-1]
    neg_inf = jnp.float32(-jnp.inf)
    tiny = jnp.float32(1e-30)

    # ---- top-1 ----
    max_val = jnp.max(scores, axis=-1, keepdims=True)
    max_ind = jnp.argmax(scores, axis=-1)[..., None]
    factor = jnp.maximum(jnp.maximum(jnp.abs(scores), max_val), tiny)
    mask = (max_val - scores) / factor > 2 * jitter_eps
    masked_gates = jnp.where(mask, neg_inf, scores)
    masked_gates = jax.nn.softmax(masked_gates, axis=-1)
    mult1 = jnp.take_along_axis(masked_gates, max_ind, axis=-1)

    # ---- top-2 (mask out the argmax and repeat) ----
    onehot1 = jax.nn.one_hot(max_ind[..., 0], E, dtype=jnp.bool_)
    masked_scores = jnp.where(onehot1, neg_inf, scores)
    max_val2 = jnp.max(masked_scores, axis=-1, keepdims=True)
    max_ind2 = jnp.argmax(masked_scores, axis=-1)[..., None]
    factor2 = jnp.maximum(jnp.maximum(jnp.abs(scores), max_val2), tiny)
    mask2 = (max_val2 - scores) / factor2 > 2 * jitter_eps
    masked_gates2 = jnp.where(mask2, neg_inf, masked_scores)
    masked_gates2 = jax.nn.softmax(masked_gates2, axis=-1)
    mult2 = jnp.take_along_axis(masked_gates2, max_ind2, axis=-1)

    weights = jnp.concatenate([mult1, mult2], axis=-1)          # (T, 2)
    ids = jnp.concatenate([max_ind, max_ind2], axis=-1)         # (T, 2)
    return weights, ids


def _routing_coeff(x_f32, gate_w, jitter_eps):
    """Router logits + top-2 sparsemixer folded into a dense (T, E) matrix."""
    logits = jnp.dot(x_f32, gate_w.astype(jnp.float32).T)       # (T, E) f32
    topk_w, topk_ids = sparsemixer_jax(logits, jitter_eps)
    E = gate_w.shape[0]
    coeff = jnp.sum(
        topk_w[..., None] * jax.nn.one_hot(topk_ids, E, dtype=jnp.float32),
        axis=1)                                                 # (T, E)
    return coeff


# ----------------------------------------------------------------------------
# tiling helpers
# ----------------------------------------------------------------------------
def _cdiv(a, b):
    return -(-a // b)


def _round_up(x, m):
    return _cdiv(x, m) * m


def _pick_tile(dim, target):
    """Largest divisor of `dim` <= target, preferring multiples of 128."""
    if dim <= target:
        return dim
    best = None
    for cand in range(target, 0, -1):
        if dim % cand == 0:
            if cand % 128 == 0:
                return cand
            if best is None:
                best = cand
    return best if best is not None else dim


def _vmem_bytes(tT, tI, H, E, in_bytes, out_bytes):
    """Rough per-core VMEM footprint estimate (double-buffered BlockSpecs)."""
    lane = 128
    b = 0
    b += 2 * tT * H * in_bytes                 # x block
    b += 2 * (2 * tI) * H * in_bytes           # fused gate/up weight block
    b += 2 * tI * H * in_bytes                 # down-proj weight block
    b += 2 * tT * max(E, lane) * 4             # routing coeff block
    b += 2 * tT * H * out_bytes                # output block
    b += tT * H * 4                            # f32 accumulator scratch
    b += tT * lane * 4                         # coeff-column scratch
    return b


# ----------------------------------------------------------------------------
# One-time weight prep (model-load time)
# ----------------------------------------------------------------------------
class PhiMoEWeights(NamedTuple):
    gate_w: jax.Array     # (E, H)      f32 router weights
    w13p: jax.Array       # (E, 2I, H)  gate/up interleaved per tI-tile
    w2t: jax.Array        # (E, I, H)   down proj, pre-transposed
    tI: int               # intermediate tile the interleave was built for


def prepack_phimoe_weights(gate_w, w13, w2, *, inter_tile=256,
                           compute_dtype=jnp.bfloat16):
    """Split / transpose / cast / interleave the MoE weights once."""
    E, two_I, H = w13.shape
    I = two_I // 2
    ib = jnp.dtype(compute_dtype).itemsize
    # Cap tI so the double-buffered weight blocks stay well under the VMEM
    # budget and leave room for activations on every TPU generation.
    cap = max(128, (16 << 20) // max(1, 6 * H * ib))
    tI = _pick_tile(I, min(inter_tile, cap))
    ni = I // tI

    w1 = w13[:, :I, :]
    w3 = w13[:, I:, :]
    # Interleave gate/up rows per tI-tile: block i of w13p (rows
    # [2*i*tI, 2*(i+1)*tI)) holds [gate i-tile ; up i-tile].
    w13p = jnp.concatenate(
        [w1.reshape(E, ni, tI, H), w3.reshape(E, ni, tI, H)],
        axis=2).reshape(E, 2 * I, H).astype(compute_dtype)
    w2t = jnp.swapaxes(w2, 1, 2).astype(compute_dtype)          # (E, I, H)
    return PhiMoEWeights(gate_w=gate_w.astype(jnp.float32), w13p=w13p,
                         w2t=w2t, tI=int(tI))


# ----------------------------------------------------------------------------
# PhiMoE forward
# ----------------------------------------------------------------------------
def phimoe_forward(hidden_states, weights: PhiMoEWeights, *, jitter_eps=0.01,
                   token_tile=512, vmem_budget=48 << 20):
    orig_shape = hidden_states.shape
    H = orig_shape[-1]
    out_dtype = hidden_states.dtype
    x = hidden_states.reshape(-1, H)
    T = x.shape[0]
    E = weights.gate_w.shape[0]
    I = weights.w2t.shape[1]
    tI = weights.tI
    ni = I // tI

    # --- router + top-2 sparsemixer -> dense (T, E) coefficient matrix ------
    coeff = _routing_coeff(x.astype(jnp.float32), weights.gate_w, jitter_eps)

    # --- token tile selection: large enough to be MXU-bound (arith intensity
    #     ~ tT flops per streamed weight byte), small enough for the 48 MiB
    #     VMEM budget (fits v7x's 64 MiB physical; v5e/v6e have 128 MiB). -----
    in_b = jnp.dtype(x.dtype).itemsize
    out_b = jnp.dtype(out_dtype).itemsize
    GRAN = 16
    tT_cap = max(GRAN, _round_up(token_tile, GRAN))
    while (_vmem_bytes(tT_cap, tI, H, E, in_b, out_b) > vmem_budget
           and tT_cap > 4 * GRAN):
        tT_cap = max(4 * GRAN, _round_up(tT_cap // 2, GRAN))

    if T > tT_cap:
        tT = tT_cap
    elif T > 4 * GRAN:
        # Split small batches in two so the "parallel" token axis can span
        # both v7x TensorCores (one extra cheap grid step on v5e/v6e).
        tT = min(tT_cap, _round_up(_cdiv(T, 2), GRAN))
    else:
        tT = _round_up(T, GRAN) if T > GRAN else max(T, min(T, GRAN)) or T
        tT = T if T <= GRAN else _round_up(T, GRAN)

    Tp = _round_up(T, tT)
    if Tp != T:
        pad = Tp - T
        x = jnp.pad(x, ((0, pad), (0, 0)))
        coeff = jnp.pad(coeff, ((0, pad), (0, 0)))
    nt = Tp // tT

    # --- per-token-tile expert schedule (active experts first, last active
    #     repeated) -> 1-D SMEM tables driving data-dependent weight DMA. ----
    coeff_t = coeff.reshape(nt, tT, E)
    tile_active = jnp.any(coeff_t > 0, axis=1)                      # (nt, E)
    nact = jnp.sum(tile_active, axis=-1).astype(jnp.int32)          # (nt,)
    ids = jnp.arange(E, dtype=jnp.int32)
    order = jnp.argsort(jnp.where(tile_active, ids, ids + E),
                        axis=-1).astype(jnp.int32)                  # actives first
    pos = jnp.minimum(ids[None, :], jnp.maximum(nact, 1)[:, None] - 1)
    sched = jnp.take_along_axis(order, pos, axis=-1).astype(jnp.int32)
    sched_flat = sched.reshape(-1)                                  # (nt*E,)

    # --- index maps ----------------------------------------------------------
    def x_map(t, e, i, sched_ref, nact_ref):
        return (t, 0)

    def coeff_map(t, e, i, sched_ref, nact_ref):
        return (t, 0)

    def out_map(t, e, i, sched_ref, nact_ref):
        return (t, 0)

    def w_map(t, e, i, sched_ref, nact_ref):
        # sched already repeats the last active expert for slots >= nact, so
        # inactive slots return the previous step's (expert, i-tile) block
        # index and the BlockSpec pipeline skips the weight DMA entirely.
        i_eff = jnp.where(e < nact_ref[t], i, ni - 1)
        return (sched_ref[t * E + e], i_eff, 0)

    est = _vmem_bytes(tT, tI, H, E, in_b, out_b)
    vmem_limit = int(min(56 << 20, max(32 << 20, est + (8 << 20))))

    out = pl.pallas_call(
        moe_kernel,
        out_shape=jax.ShapeDtypeStruct((Tp, H), out_dtype),
        grid_spec=pltpu.PrefetchScalarGridSpec(
            num_scalar_prefetch=2,
            grid=(nt, E, ni),
            in_specs=[
                pl.BlockSpec((tT, H), x_map),                   # x
                pl.BlockSpec((None, 2 * tI, H), w_map),         # fused gate/up
                pl.BlockSpec((None, tI, H), w_map),             # down proj (pre-T)
                pl.BlockSpec((tT, E), coeff_map),               # routing coeff
            ],
            out_specs=pl.BlockSpec((tT, H), out_map),
            scratch_shapes=[pltpu.VMEM((tT, H), jnp.float32),
                            pltpu.VMEM((tT, 1), jnp.float32)],
        ),
        compiler_params=pltpu.CompilerParams(
            dimension_semantics=("parallel", "arbitrary", "arbitrary"),
            vmem_limit_bytes=vmem_limit),
    )(sched_flat, nact, x, weights.w13p, weights.w2t, coeff)

    return out[:T].reshape(orig_shape)


# ----------------------------------------------------------------------------
# Pure-JAX reference (same math / dtype path, no Pallas)
# ----------------------------------------------------------------------------
def phimoe_reference(hidden_states, gate_w, w13, w2, jitter_eps=0.01):
    orig_shape = hidden_states.shape
    H = orig_shape[-1]
    x = hidden_states.reshape(-1, H)
    T = x.shape[0]
    E, two_I, _ = w13.shape
    I = two_I // 2

    coeff = _routing_coeff(x.astype(jnp.float32), gate_w, jitter_eps)
    cd = x.dtype
    w1 = w13[:, :I, :].astype(cd)
    w3 = w13[:, I:, :].astype(cd)
    w2t = jnp.swapaxes(w2, 1, 2).astype(cd)

    out = jnp.zeros((T, H), jnp.float32)
    for e in range(E):
        g = lax.dot_general(x, w1[e], (((1,), (1,)), ((), ())),
                            preferred_element_type=jnp.float32)
        u = lax.dot_general(x, w3[e], (((1,), (1,)), ((), ())),
                            preferred_element_type=jnp.float32)
        act = g * jax.nn.sigmoid(g) * u
        act = (act * coeff[:, e:e + 1]).astype(cd)
        out = out + jnp.dot(act, w2t[e], preferred_element_type=jnp.float32)
    return out.astype(hidden_states.dtype).reshape(orig_shape)


# ----------------------------------------------------------------------------
if __name__ == "__main__":
    batch, seq = 2, 4
    hidden_size = 32
    intermediate_size = 64
    num_experts = 8          # top_k = 2 (implicit in sparsemixer)

    key = jax.random.PRNGKey(0)
    k_x, k_g, k_w13, k_w2 = jax.random.split(key, 4)

    hidden_states = jax.random.normal(
        k_x, (batch, seq, hidden_size), dtype=jnp.float32).astype(jnp.bfloat16)
    gate_w = (0.1 * jax.random.normal(
        k_g, (num_experts, hidden_size), dtype=jnp.float32)).astype(jnp.bfloat16)
    w13 = (0.1 * jax.random.normal(
        k_w13, (num_experts, 2 * intermediate_size, hidden_size),
        dtype=jnp.float32)).astype(jnp.bfloat16)
    w2 = (0.1 * jax.random.normal(
        k_w2, (num_experts, hidden_size, intermediate_size),
        dtype=jnp.float32)).astype(jnp.bfloat16)

    packed = prepack_phimoe_weights(gate_w, w13, w2)   # once, at "load time"
    out = phimoe_forward(hidden_states, packed)
    out = jax.block_until_ready(out)

    ref = phimoe_reference(hidden_states, gate_w, w13, w2)
    assert out.shape == hidden_states.shape
    err = float(jnp.max(jnp.abs(out.astype(jnp.float32) - ref.astype(jnp.float32))))
    assert err < 2e-2, f"max abs err {err}"

    print("KERNEL_OK")
</pallas_src>

<mosaic_0001>
module attributes {stable_mosaic.version = 11 : i64} {
  func.func @moe_kernel(%arg0: i32, %arg1: i32, %arg2: i32, %arg3: memref<8xi32, #tpu.memory_space<smem>>, %arg4: memref<1xi32, #tpu.memory_space<smem>>, %arg5: memref<8x32xbf16, #tpu.memory_space<vmem>>, %arg6: memref<1x128x32xbf16, #tpu.memory_space<vmem>>, %arg7: memref<1x64x32xbf16, #tpu.memory_space<vmem>>, %arg8: memref<8x8xf32, #tpu.memory_space<vmem>>, %arg9: memref<8x32xbf16, #tpu.memory_space<vmem>>, %arg10: memref<8x32xf32, #tpu.memory_space<vmem>>, %arg11: memref<8x1xf32, #tpu.memory_space<vmem>>) attributes {dimension_semantics = [#tpu.dimension_semantics<parallel>, #tpu.dimension_semantics<arbitrary>, #tpu.dimension_semantics<arbitrary>], iteration_bounds = array<i64: 1, 8, 1>, scalar_prefetch = 2 : i64, scratch_operands = 2 : i64, tpu.core_type = #tpu.core_type<tc>, window_params = [{transform_indices = @transform_0, window_bounds = array<i64: 8, 32>}, {transform_indices = @transform_1, window_bounds = array<i64: 1, 128, 32>}, {transform_indices = @transform_2, window_bounds = array<i64: 1, 64, 32>}, {transform_indices = @transform_3, window_bounds = array<i64: 8, 8>}, {transform_indices = @transform_4, window_bounds = array<i64: 8, 32>}]} {
    %c0_i32 = arith.constant 0 : i32
    %0 = arith.cmpi eq, %arg1, %c0_i32 : i32
    %c0_i32_0 = arith.constant 0 : i32
    %1 = arith.cmpi eq, %arg2, %c0_i32_0 : i32
    %2 = arith.andi %0, %1 : i1
    %3 = arith.extui %2 : i1 to i32
    %c0_i32_1 = arith.constant 0 : i32
    %4 = arith.cmpi ne, %3, %c0_i32_1 : i32
    scf.if %4 {
      %cst = arith.constant 0.000000e+00 : f32
      %19 = vector.broadcast %cst : f32 to vector<8x32xf32>
      %c0 = arith.constant 0 : index
      %c0_7 = arith.constant 0 : index
      %20 = vector.load %arg10[%c0, %c0_7] : memref<8x32xf32, #tpu.memory_space<vmem>>, vector<8x32xf32>
      tpu.vector_store %arg10[%c0, %c0_7], %19 {strides = array<i32>} : memref<8x32xf32, #tpu.memory_space<vmem>>, vector<8x32xf32>,
    } else {
    }
    %5 = arith.index_cast %arg0 : i32 to index
    %6 = memref.load %arg4[%5] : memref<1xi32, #tpu.memory_space<smem>>
    %7 = arith.cmpi slt, %arg1, %6 : i32
    %c0_i32_2 = arith.constant 0 : i32
    %8 = arith.cmpi eq, %arg2, %c0_i32_2 : i32
    %9 = arith.andi %7, %8 : i1
    %10 = arith.extui %9 : i1 to i32
    %c0_i32_3 = arith.constant 0 : i32
    %11 = arith.cmpi ne, %10, %c0_i32_3 : i32
    scf.if %11 {
      %c8_i32 = arith.constant 8 : i32
      %19 = arith.muli %arg0, %c8_i32 : i32
      %20 = arith.addi %19, %arg1 : i32
      %21 = arith.index_cast %20 : i32 to index
      %22 = memref.load %arg3[%21] : memref<8xi32, #tpu.memory_space<smem>>
      %23 = tpu.iota {dimensions = array<i32: 1>} : vector<8x8xi32>
      %24 = vector.broadcast %22 : i32 to vector<8x8xi32>
      %25 = arith.cmpi eq, %23, %24 : vector<8x8xi32>
      %c0 = arith.constant 0 : index
      %c0_7 = arith.constant 0 : index
      %26 = vector.load %arg8[%c0, %c0_7] : memref<8x8xf32, #tpu.memory_space<vmem>>, vector<8x8xf32>
      %cst = arith.constant 0.000000e+00 : f32
      %27 = vector.broadcast %cst : f32 to vector<8x8xf32>
      %28 = arith.select %25, %26, %27 : vector<8x8xi1>, vector<8x8xf32>
      %cst_8 = arith.constant dense<0.000000e+00> : vector<8xf32>
      %29 = vector.multi_reduction <add>, %28, %cst_8 [1] : vector<8x8xf32> to vector<8xf32>
      %30 = vector.shape_cast %29 : vector<8xf32> to vector<8x1xf32>
      %c0_9 = arith.constant 0 : index
      %c0_10 = arith.constant 0 : index
      %31 = vector.load %arg11[%c0_9, %c0_10] : memref<8x1xf32, #tpu.memory_space<vmem>>, vector<8x1xf32>
      tpu.vector_store %arg11[%c0_9, %c0_10], %30 {strides = array<i32>} : memref<8x1xf32, #tpu.memory_space<vmem>>, vector<8x1xf32>,
    } else {
    }
    %12 = arith.extui %7 : i1 to i32
    %c0_i32_4 = arith.constant 0 : i32
    %13 = arith.cmpi ne, %12, %c0_i32_4 : i32
    scf.if %13 {
      %c0 = arith.constant 0 : index
      %c0_7 = arith.constant 0 : index
      %19 = vector.load %arg5[%c0, %c0_7] : memref<8x32xbf16, #tpu.memory_space<vmem>>, vector<8x32xbf16>
      %c0_8 = arith.constant 0 : index
      %c0_9 = arith.constant 0 : index
      %c0_10 = arith.constant 0 : index
      %20 = vector.load %arg6[%c0_8, %c0_9, %c0_10] : memref<1x128x32xbf16, #tpu.memory_space<vmem>>, vector<1x64x32xbf16>
      %21 = vector.shape_cast %20 : vector<1x64x32xbf16> to vector<64x32xbf16>
      %cst = arith.constant dense<0.000000e+00> : vector<8x64xf32>
      %22 = tpu.matmul %19, %21, %cst {dimension_numbers = #tpu.dot_dimension_numbers<[1], [1], [0], [0], [0, 0, 1, 0], [], []>} : vector<8x32xbf16>, vector<64x32xbf16>, vector<8x64xf32> -> vector<8x64xf32>
      %c0_11 = arith.constant 0 : index
      %c64 = arith.constant 64 : index
      %c0_12 = arith.constant 0 : index
      %23 = vector.load %arg6[%c0_11, %c64, %c0_12] : memref<1x128x32xbf16, #tpu.memory_space<vmem>>, vector<1x64x32xbf16>
      %24 = vector.shape_cast %23 : vector<1x64x32xbf16> to vector<64x32xbf16>
      %cst_13 = arith.constant dense<0.000000e+00> : vector<8x64xf32>
      %25 = tpu.matmul %19, %24, %cst_13 {dimension_numbers = #tpu.dot_dimension_numbers<[1], [1], [0], [0], [0, 0, 1, 0], [], []>} : vector<8x32xbf16>, vector<64x32xbf16>, vector<8x64xf32> -> vector<8x64xf32>
      %26 = arith.negf %22 : vector<8x64xf32>
      %27 = math.exp %26 : vector<8x64xf32>
      %cst_14 = arith.constant 1.000000e+00 : f32
      %28 = vector.broadcast %cst_14 : f32 to vector<8x64xf32>
      %29 = arith.addf %28, %27 : vector<8x64xf32>
      %30 = arith.divf %28, %29 : vector<8x64xf32>
      %31 = arith.mulf %22, %30 : vector<8x64xf32>
      %32 = arith.mulf %31, %25 : vector<8x64xf32>
      %c0_15 = arith.constant 0 : index
      %c0_16 = arith.constant 0 : index
      %33 = vector.load %arg11[%c0_15, %c0_16] : memref<8x1xf32, #tpu.memory_space<vmem>>, vector<8x1xf32>
      %34 = vector.broadcast %33 : vector<8x1xf32> to vector<8x64xf32>
      %35 = arith.mulf %32, %34 : vector<8x64xf32>
      %36 = arith.truncf %35 : vector<8x64xf32> to vector<8x64xbf16>
      %c0_17 = arith.constant 0 : index
      %c0_18 = arith.constant 0 : index
      %37 = vector.load %arg10[%c0_17, %c0_18] : memref<8x32xf32, #tpu.memory_space<vmem>>, vector<8x32xf32>
      %c0_19 = arith.constant 0 : index
      %c0_20 = arith.constant 0 : index
      %c0_21 = arith.constant 0 : index
      %38 = vector.load %arg7[%c0_19, %c0_20, %c0_21] : memref<1x64x32xbf16, #tpu.memory_space<vmem>>, vector<1x64x32xbf16>
      %39 = vector.shape_cast %38 : vector<1x64x32xbf16> to vector<64x32xbf16>
      %cst_22 = arith.constant dense<0.000000e+00> : vector<8x32xf32>
      %40 = tpu.matmul %36, %39, %cst_22 {dimension_numbers = #tpu.dot_dimension_numbers<[1], [0], [0], [1], [0, 0, 1, 1], [], []>} : vector<8x64xbf16>, vector<64x32xbf16>, vector<8x32xf32> -> vector<8x32xf32>
      %41 = arith.addf %37, %40 : vector<8x32xf32>
      %c0_23 = arith.constant 0 : index
      %c0_24 = arith.constant 0 : index
      %42 = vector.load %arg10[%c0_23, %c0_24] : memref<8x32xf32, #tpu.memory_space<vmem>>, vector<8x32xf32>
      tpu.vector_store %arg10[%c0_23, %c0_24], %41 {strides = array<i32>} : memref<8x32xf32, #tpu.memory_space<vmem>>, vector<8x32xf32>,
    } else {
    }
    %c7_i32 = arith.constant 7 : i32
    %14 = arith.cmpi eq, %arg1, %c7_i32 : i32
    %c0_i32_5 = arith.constant 0 : i32
    %15 = arith.cmpi eq, %arg2, %c0_i32_5 : i32
    %16 = arith.andi %14, %15 : i1
    %17 = arith.extui %16 : i1 to i32
    %c0_i32_6 = arith.constant 0 : i32
    %18 = arith.cmpi ne, %17, %c0_i32_6 : i32
    scf.if %18 {
      %c0 = arith.constant 0 : index
      %c0_7 = arith.constant 0 : index
      %19 = vector.load %arg10[%c0, %c0_7] : memref<8x32xf32, #tpu.memory_space<vmem>>, vector<8x32xf32>
      %20 = arith.truncf %19 : vector<8x32xf32> to vector<8x32xbf16>
      %c0_8 = arith.constant 0 : index
      %c0_9 = arith.constant 0 : index
      %21 = vector.load %arg9[%c0_8, %c0_9] : memref<8x32xbf16, #tpu.memory_space<vmem>>, vector<8x32xbf16>
      tpu.vector_store %arg9[%c0_8, %c0_9], %20 {strides = array<i32>} : memref<8x32xbf16, #tpu.memory_space<vmem>>, vector<8x32xbf16>,
    } else {
    }
    return
  }
  func.func @transform_0(%arg0: i32, %arg1: i32, %arg2: i32, %arg3: memref<8xi32, #tpu.memory_space<smem>>, %arg4: memref<1xi32, #tpu.memory_space<smem>>) -> (i32, i32) {
    %c0_i32 = arith.constant 0 : i32
    %c0_i32_0 = arith.constant 0 : i32
    return %arg0, %c0_i32 : i32, i32
  }
  func.func @transform_1(%arg0: i32, %arg1: i32, %arg2: i32, %arg3: memref<8xi32, #tpu.memory_space<smem>>, %arg4: memref<1xi32, #tpu.memory_space<smem>>) -> (i32, i32, i32) {
    %0 = arith.index_cast %arg0 : i32 to index
    %1 = memref.load %arg4[%0] : memref<1xi32, #tpu.memory_space<smem>>
    %2 = arith.cmpi slt, %arg1, %1 : i32
    %c0_i32 = arith.constant 0 : i32
    %3 = arith.select %2, %arg2, %c0_i32 : i32
    %c8_i32 = arith.constant 8 : i32
    %4 = arith.muli %arg0, %c8_i32 : i32
    %5 = arith.addi %4, %arg1 : i32
    %6 = arith.index_cast %5 : i32 to index
    %7 = memref.load %arg3[%6] : memref<8xi32, #tpu.memory_space<smem>>
    %c0_i32_0 = arith.constant 0 : i32
    %c0_i32_1 = arith.constant 0 : i32
    return %7, %3, %c0_i32_0 : i32, i32, i32
  }
  func.func @transform_2(%arg0: i32, %arg1: i32, %arg2: i32, %arg3: memref<8xi32, #tpu.memory_space<smem>>, %arg4: memref<1xi32, #tpu.memory_space<smem>>) -> (i32, i32, i32) {
    %0 = arith.index_cast %arg0 : i32 to index
    %1 = memref.load %arg4[%0] : memref<1xi32, #tpu.memory_space<smem>>
    %2 = arith.cmpi slt, %arg1, %1 : i32
    %c0_i32 = arith.constant 0 : i32
    %3 = arith.select %2, %arg2, %c0_i32 : i32
    %c8_i32 = arith.constant 8 : i32
    %4 = arith.muli %arg0, %c8_i32 : i32
    %5 = arith.addi %4, %arg1 : i32
    %6 = arith.index_cast %5 : i32 to index
    %7 = memref.load %arg3[%6] : memref<8xi32, #tpu.memory_space<smem>>
    %c0_i32_0 = arith.constant 0 : i32
    %c0_i32_1 = arith.constant 0 : i32
    return %7, %3, %c0_i32_0 : i32, i32, i32
  }
  func.func @transform_3(%arg0: i32, %arg1: i32, %arg2: i32, %arg3: memref<8xi32, #tpu.memory_space<smem>>, %arg4: memref<1xi32, #tpu.memory_space<smem>>) -> (i32, i32) {
    %c0_i32 = arith.constant 0 : i32
    %c0_i32_0 = arith.constant 0 : i32
    return %arg0, %c0_i32 : i32, i32
  }
  func.func @transform_4(%arg0: i32, %arg1: i32, %arg2: i32, %arg3: memref<8xi32, #tpu.memory_space<smem>>, %arg4: memref<1xi32, #tpu.memory_space<smem>>) -> (i32, i32) {
    %c0_i32 = arith.constant 0 : i32
    %c0_i32_0 = arith.constant 0 : i32
    return %arg0, %c0_i32 : i32, i32
  }
}

</mosaic_0001>

<bundles_post_ra>
// kernel: tpu_custom_call.1
= control target key start
LH: loop header
LB: loop body
LE: loop exit
PB: predicated region body
PF: predicated region fallthrough
CT: control target
= control target key end

     0   :  { %s937_s26 = smov [#allocation5]   ;;  %s1063_s0 = inlined_call_operand.vmem [shape: s32[8], index: 0, kind: input, shape index: {}]   ;;  %s1064_s1 = inlined_call_operand.<no memory space> [shape: s32[1], index: 1, kind: input, shape index: {}]   ;;  %s1065_s2 = inlined_call_operand.vmem [shape: bf16[8,32], index: 2, kind: input, shape index: {}]   ;;  %s1066_s3 = inlined_call_operand.vmem [shape: bf16[8,128,32], index: 3, kind: input, shape index: {}]   ;;  %s1067_s4 = inlined_call_operand.vmem [shape: bf16[8,64,32], index: 4, kind: input, shape index: {}]   ;;  %s1068_s5 = inlined_call_operand.vmem [shape: f32[8,8], index: 5, kind: input, shape index: {}]   ;;  %s1069_s6 = inlined_call_operand.hbm [shape: bf16[8,32], index: 6, kind: output, shape index: {}]  }
   0x1   :  { %s12_s23 = sshll.u32 %s1063_s0, 4  ;;  %16 = sst [smem:[#allocation6]] %s1064_s1  ;;  %s13_s23 = int_to_ptr.vmem [resolvable:$true] %s12_s23 }
   0x2   :  { %15 = dma.vmem_to_smem %s13_s23, 16, %s937_s26, [#allocation4] }
   0x3   :  { %919 = dma.done.wait [#allocation4], 16 }
   0x4   :  { %920 = vsyncadd [#allocation4], 4294967280 }
   0x5   :  { %19 = sfence }
   0x6   :  { %20 = vsyncpa [#allocation8], 0  ;;  %s982_s27 = smov 0   ;;  %s984_s28 = smov 0  }
   0x7   :  { %s986_s29 = smov 0  }
   0x8 LB: > { %s741_s0 = sadd.s32 4294967295, %s935_s29   ;;  %s41_s1 = sadd.s32 1, %s931_s28  ;;  %s935_s29 = sphi %s986_s29, %s26_s29   ;;  %s931_s28 = sphi %s984_s28, %s1071_s28   ;;  %s927_s27 = sphi %s982_s27, %s1070_s27  }
   0x9   : > { %p43_p0 = scmp.ge.s32.totalorder %s41_s1, 8  ;;  %p746_p1 = scmp.ge.s32.totalorder %s935_s29, 1 }
   0xa   : > { %p283_p2 = scmp.lt.s32.totalorder %s935_s29, 9 }
   0xb   : > { %s1073_s1 = smov (%p43_p0, %s41_s1), 0 }
   0xc   : > { %p284_p3 = pnand %p746_p1, %p283_p2 }
   0xd   : > { %s346_s30 = sld [smem:[#allocation5 + %s927_s27]] (!%p284_p3)  ;;  %p390_p4 = scmp.eq.s32.totalorder (!%p284_p3), %s927_s27, 0 }
   0xe   : > { %287 = sbr.rel (%p284_p3) target bundleno = 514 (0x202), region = 36  ;;  %s368_s7 = sld [smem:[#allocation5 + %s927_s27]] (!%p284_p3) }
  0x13   : > { %p348_p5 = scmp.lt.s32.totalorder %s346_s30, 7  ;;  %vm396_vm0 = vcmask (%p390_p4), 261120   ;;  %v938_v0 = vmov (%p390_p4), 0.0  }
  0x14   : > { %p370_p6 = scmp.lt.s32.totalorder %s368_s7, 7  ;;  %395 = sbr.rel (!%p390_p4) target bundleno = 25 (0x19), region = 40  ;;  %397 = vst.msk [vmem:[#allocation2] sm:$0xff] (%p390_p4), %vm396_vm0, %v938_v0 }
  0x15   : > { %s1075_s30 = smov (!%p348_p5, %s346_s30), 7 }
  0x16   : > { %s1077_s7 = smov (!%p370_p6, %s368_s7), 7  ;;  %s811_s8 = sshll.u32 %s1075_s30, 6 }
  0x17   : > { %s1009_s11 = scalar_lea.vmem %s1066_s3, %s811_s8  ;;  %s812_s12 = sshll.u32 %s1077_s7, 5 }
  0x18   : > { %s1014_s15 = scalar_lea.vmem %s1067_s4, %s812_s12 }
  0x19 PF: > { %s398_s16 = sld [smem:[#allocation6]] }
  0x1f   : > { %p399_p7 = scmp.lt.s32.totalorder %s927_s27, %s398_s16 }
  0x20   : > { %s406_s17 = sld [smem:[#allocation5 + %s927_s27]] (%p399_p7)  ;;  %v407_v1 = vlaneseq (%p399_p7)  ;;  %v411_v3 = vld [vmem:[%s1068_s5] sm:$0xff] (%p399_p7)  ;;  %vm413_vm1 = vcmask (%p399_p7), 64512   ;;  %vm417_vm3 = vcmask (%p399_p7), 7168  }
  0x21   : > { %403 = sbr.rel (!%p399_p7) target bundleno = 159 (0x9f), region = 44 }
  0x22   : > { %v408_v2 = vand.u32 (%p399_p7), 127, %v407_v1 }
  0x26   : > { %v409_v4 = vstv %s406_s17 }
  0x27   : > { %vm410_vm2 = vcmp.eq.s32.totalorder %v408_v2, %v409_v4 }
  0x28   : > { %v412_v5 = vsel %vm410_vm2, %v411_v3, 0.0 }
  0x29   : > { %v414_v6 = vsel %vm413_vm1, %v412_v5, 0.0 }
  0x2a   : > { %415 = vadd.xlane.f32.xlu0 %v414_v6 }
  0x9d   : > { %v416_v7 = vpop.xlane.xlu0 %415 }
  0x9e   : > { %418 = vst.msk [vmem:[#allocation3] sm:$0xff] %vm417_vm3, %v416_v7 }
  0x9f PF: > { %p753_p8 = scmp.ge.s32.totalorder %s927_s27, %s398_s16 }
  0xa1   : > { %421 = sbr.rel (%p753_p8) target bundleno = 501 (0x1f5), region = 48 }
  0xa6   : > { %v818_v8 = vld [vmem:[%s1009_s11 + $0x18] sm:$0xff]  ;;  %vm451_vm4 = vcmask 261120   ;;  %v554_v12 = vld [vmem:[#allocation3] sm:$0xff]  ;;  %v817_v13 = vld [vmem:[%s1009_s11 + $0x10] sm:$0xff]  ;;  %v939_v14 = vmov 0   ;;  %vm595_vm9 = vcmask 523264  }
  0xa7   : > { %v822_v9 = vld [vmem:[%s1009_s11 + $0x38] sm:$0xff]  ;;  %v465_v10 = vsel %vm451_vm4, %v818_v8, 0  ;;  %862 = vset.pattern.permute.xlu0 %v939_v14  ;;  %v821_v15 = vld [vmem:[%s1009_s11 + $0x30] sm:$0xff]  ;;  %v462_v16 = vsel %vm451_vm4, %v817_v13, 0  ;;  %v816_v18 = vld [vmem:[%s1009_s11 + $0x8] sm:$0xff] }
  0xa8   : > { %471 = vmatpush.bf16.xpose.msra.mxu0 %v465_v10  ;;  %v518_v11 = vsel %vm451_vm4, %v822_v9, 0  ;;  %557 = vperm.xlu0 %862, %v554_v12   ;;  %v515_v17 = vsel %vm451_vm4, %v821_v15, 0  ;;  %v820_v19 = vld [vmem:[%s1009_s11 + $0x28] sm:$0xff]  ;;  %v459_v20 = vsel %vm451_vm4, %v816_v18, 0  ;;  %v815_v22 = vld [vmem:[%s1009_s11] sm:$0xff]  ;;  %v826_v27 = vld [vmem:[%s1014_s15 + $0x18] sm:$0xff] }
  0xa9   : > { %524 = vmatpush.bf16.xpose.msra.mxu1 %v518_v11  ;;  %v512_v21 = vsel %vm451_vm4, %v820_v19, 0  ;;  %v819_v23 = vld [vmem:[%s1009_s11 + $0x20] sm:$0xff]  ;;  %v456_v24 = vsel %vm451_vm4, %v815_v22, 0  ;;  %603 = vmatpush.bf16.msra.mxu2 %v826_v27  ;;  %v825_v28 = vld [vmem:[%s1014_s15 + $0x10] sm:$0xff]  ;;  %v824_v29 = vld [vmem:[%s1014_s15 + $0x8] sm:$0xff] }
  0xaa   : > { %v509_v25 = vsel %vm451_vm4, %v819_v23, 0  ;;  %v422_v26 = vld [vmem:[%s1065_s2] sm:$0xf] }
  0xab   : > { %v823_v31 = vld [vmem:[%s1014_s15] sm:$0xff] }
  0xac   : > { %v562_v53 = vld [vmem:[#allocation2] sm:$0xff] }
  0xad   : > { %604 = vmatpush.bf16.msra.mxu2 %v825_v28 }
  0xb0   : > { %472 = vmatpush.bf16.xpose.msra.mxu0 %v462_v16 }
  0xb1   : > { %525 = vmatpush.bf16.xpose.msra.mxu1 %v515_v17  ;;  %605 = vmatpush.bf16.msra.mxu2 %v824_v29 }
  0xb5   : > { %606 = vmatpush.bf16.msra.mxu2 %v823_v31 }
  0xb8   : > { %473 = vmatpush.bf16.xpose.msra.mxu0 %v459_v20 }
  0xb9   : > { %526 = vmatpush.bf16.xpose.msra.mxu1 %v512_v21 }
  0xc0   : > { %474 = vmatpush.bf16.xpose.msra.mxu0 %v456_v24 }
  0xc1   : > { %527 = vmatpush.bf16.xpose.msra.mxu1 %v509_v25 }
  0xc7   : > { %770 = vmatmul.msk.bf16.vlgmr.msra.gmra.mxu0 %vm451_vm4, %v422_v26 }
  0xc8   : > { %787 = vmatmul.msk.bf16.vlgmr.msra.gmra.mxu1 %vm451_vm4, %v422_v26 }
 0x11a   : > { %v558_v49 = vpop.permute.xlu0 %557 }
 0x144   : > { %v476_v30 = vpop.f32.mrf.mxu0 }
 0x145   : > { %v788_v32 = vmul.f32 -1.442695, %v476_v30  ;;  %v529_v33 = vpop.f32.mrf.mxu1 }
 0x147   : > { %863 = vpow2.f32 %v788_v32 }
 0x14c   : > { %v478_v34 = vpop.f32.mrf.mxu0 }
 0x14d   : > { %v864_v35 = vpop.eup %863  ;;  %v531_v36 = vpop.f32.mrf.mxu1 }
 0x14e   : > { %v536_v37 = vadd.f32 1.0, %v864_v35 }
 0x150   : > { %865 = vrcp.f32 %v536_v37  ;;  %v548_v41 = vand.u32 2147483648, %v536_v37  ;;  %v546_v43 = vand.u32 2147483647, %v536_v37  ;;  %vm542_vm6 = vweird.f32 %v536_v37 }
 0x152   : > { %v549_v45 = vor.u32 1.1754944e-38, %v548_v41  ;;  %vm547_vm8 = vcmp.eq.f32.partialorder %v546_v43, 8.507059e+37 }
 0x156   : > { %v866_v38 = vpop.eup %865 }
 0x157   : > { %v538_v39 = vmul.f32 %v866_v38, %v536_v37  ;;  %vm543_vm5 = vweird.f32 %v866_v38 }
 0x158   : > { %vm544_vm7 = vmor %vm542_vm6, %vm543_vm5 }
 0x159   : > { %v539_v40 = vsub.f32 1.0, %v538_v39 }
 0x15b   : > { %v540_v42 = vmul.f32 %v866_v38, %v539_v40 }
 0x15d   : > { %v541_v44 = vadd.f32 %v866_v38, %v540_v42 }
 0x15f   : > { %v545_v46 = vsel %vm544_vm7, %v866_v38, %v541_v44 }
 0x160   : > { %v550_v47 = vsel %vm547_vm8, %v549_v45, %v545_v46 }
 0x161   : > { %v552_v48 = vmul.f32 %v550_v47, %v476_v30 }
 0x163   : > { %v553_v50 = vmul.f32 %v552_v48, %v529_v33 }
 0x165   : > { %v560_v51 = vmul.f32 %v558_v49, %v553_v50 }
 0x167   : > { %v561_v52 = vpack.c.bf16 %v560_v51, %v560_v51 }
 0x169   : > { %805 = vmatmul.msk.bf16.vlgmr.msra.gmra.mxu2 %vm595_vm9, %v561_v52 }
 0x1ec   : > { %v608_v54 = vpop.f32.mrf.mxu2 }
 0x1ed   : > { %v612_v55 = vadd.f32 %v608_v54, %v562_v53 }
 0x1ef   : > { %613 = vst.msk [vmem:[#allocation2] sm:$0xff] %vm451_vm4, %v612_v55 }
 0x1f4   : > { %v610_v56 = vpop.f32.mrf.mxu2 }
 0x1f5 PF: > { %p614_p9 = scmp.eq.s32.totalorder %s927_s27, 7 }
 0x1f6   : > { %v619_v57 = vld [vmem:[#allocation2] sm:$0xff] (%p614_p9)  ;;  %vm621_vm10 = vcmask (%p614_p9), 257024  }
 0x1f7   : > { %618 = sbr.rel (!%p614_p9) target bundleno = 508 (0x1fc), region = 52  ;;  %v620_v58 = vpack.c.bf16 (%p614_p9), %v619_v57, %v619_v57 }
 0x1f9   : > { %622 = vst.msk [vmem:[#allocation7] sm:$0xf] (%p614_p9), %vm621_vm10, %v620_v58 }
 0x1fc PF: > { %p832_p10 = scmp.eq.s32.totalorder %s741_s0, 7  ;;  %s633_s24 = sshll.u32 %s1069_s6, 4  ;;  %s634_s24 = int_to_ptr.hbm [resolvable:$true] %s633_s24 }
 0x1fd   : > { %s940_s25 = smov [#allocation7]  }
 0x1fe   : > { %s631_s26 = sshll.u32 %s940_s25, 4  ;;  %s632_s26 = int_to_ptr.vmem [resolvable:$true] %s631_s26 }
 0x1ff   : > { %829 = dma.vmem_to_hbm [thread:$0]  (%p832_p10), %s632_s26, 64, %s634_s24, [#allocation8]  }
 0x200   : > { %922 = dma.done.wait (%p832_p10), [#allocation8], 64  }
 0x201   : > { %924 = vsyncadd (%p832_p10), [#allocation8], 4294967232 }
 0x202 PF: > { %s26_s29 = sadd.s32 1, %s935_s29   ;;  %s1070_s27 = smov %s931_s28 }
 0x203   : > { %p23_p11 = scmp.ge.s32.totalorder %s26_s29, 10   ;;  %s1071_s28 = smov %s1073_s1 }
 0x205   :  { %25 = sbr.rel (!%p23_p11) target bundleno = 8 (0x8), region = 89 }
 0x20a   :  { %647 = vsyncpa [#allocation8], 1 }
 0x20b   :  { %649 = vsyncpa [#allocation8 + $0x1], 1 }

</bundles_post_ra>
